<compile_context>
chip_gen: v7x
topology: tpu7x:2x2x1
jax: 0.10.0
libtpu: 0.0.40
codegen_flags: <defaults>
</compile_context>

<pallas_src>
import functools

import jax
import jax.numpy as jnp
from jax.experimental import pallas as pl
from jax.experimental.pallas import tpu as pltpu


def _sppf_kernel(x_ref, w1_ref, b1_ref, w2_ref, b2_ref, o_ref, *, H, W, k):
    # x_ref : (C1, H*W)     one batch element, spatial flattened (lane-dense)
    # w1_ref: (C_, C1)      cv1 weight, BN folded
    # b1_ref: (C_, 1)       cv1 folded bias
    # w2_ref: (C2, 4*C_)    cv2 weight, BN folded
    # b2_ref: (C2, 1)       cv2 folded bias
    # o_ref : (C2, H*W)
    HW = H * W
    p = k // 2
    neg = jnp.finfo(jnp.float32).min  # windows always contain the center, so
                                      # finite "-inf" padding is exact.

    x = x_ref[...]

    # ---- cv1: 1x1 conv (+ folded BN) + SiLU --------------------------------
    t = jnp.dot(w1_ref[...], x, preferred_element_type=jnp.float32) + b1_ref[...]
    x1 = t * (1.0 / (1.0 + jnp.exp(-t)))            # SiLU, (C_, HW) float32
    C_ = x1.shape[0]

    # ---- 5x5 / stride-1 / pad-2 max pool, separable, flat layout -----------
    # Lane-position masks hoisted once and reused by all three pools.
    lane = jax.lax.broadcasted_iota(jnp.int32, (C_, HW), 1)
    wpos = lane % W
    w_ok_fwd = [wpos + d < W for d in range(1, p + 1)]   # x[h, w+d] stays in-row
    w_ok_bwd = [wpos - d >= 0 for d in range(1, p + 1)]  # x[h, w-d] stays in-row

    def shift_fwd(a, s):  # out[i] = a[i + s], tail filled with -inf
        return jnp.concatenate([a[:, s:], jnp.full((C_, s), neg, a.dtype)], axis=1)

    def shift_bwd(a, s):  # out[i] = a[i - s], head filled with -inf
        return jnp.concatenate([jnp.full((C_, s), neg, a.dtype), a[:, :HW - s]], axis=1)

    def pool(a):
        # Max along W (window k): shifts +-1..+-p, masked to stay inside a row.
        m = a
        for i, d in enumerate(range(1, p + 1)):
            m = jnp.maximum(m, jnp.where(w_ok_fwd[i], shift_fwd(a, d), neg))
            m = jnp.maximum(m, jnp.where(w_ok_bwd[i], shift_bwd(a, d), neg))
        # Max along H: shifts by +-d*W.  Row validity is handled exactly by the
        # -inf head/tail of the shift (i +- d*W leaves [0, HW) precisely when
        # h +- d leaves [0, H)), so no extra mask is needed.
        out = m
        for d in range(1, p + 1):
            out = jnp.maximum(out, shift_fwd(m, d * W))
            out = jnp.maximum(out, shift_bwd(m, d * W))
        return out

    y1 = pool(x1)
    y2 = pool(y1)
    y3 = pool(y2)

    # ---- cv2 on concat([x1, y1, y2, y3], channel axis) + SiLU --------------
    cat = jnp.concatenate([x1, y1, y2, y3], axis=0)          # (4*C_, HW)
    u = jnp.dot(w2_ref[...], cat, preferred_element_type=jnp.float32) + b2_ref[...]
    o_ref[...] = (u * (1.0 / (1.0 + jnp.exp(-u)))).astype(o_ref.dtype)


def fold_conv_bn(w, gamma, beta, mean, var, eps=1e-5):
    """Fold eval-mode BatchNorm2d into a bias-free 1x1 conv.  w: (C_out, C_in)."""
    scale = gamma / jnp.sqrt(var + eps)
    w_f = (w * scale[:, None]).astype(jnp.float32)
    b_f = (beta - mean * scale).astype(jnp.float32)
    return w_f, b_f


def sppf(x, w1, b1, w2, b2, k=5):
    """SPPF forward with BN already folded into (w1, b1) and (w2, b2).

    x : (N, C1, H, W) NCHW (same as PyTorch).
    w1: (C_, C1),  b1: (C_,),  w2: (C2, 4*C_),  b2: (C2,).
    Returns (N, C2, H, W).
    """
    N, C1, H, W = x.shape
    C_ = w1.shape[0]
    C2 = w2.shape[0]
    HW = H * W
    assert w1.shape == (C_, C1) and w2.shape == (C2, 4 * C_)

    x2d = x.reshape(N, C1, HW)                        # free reshape of contiguous NCHW
    w1f = w1.astype(jnp.float32)
    w2f = w2.astype(jnp.float32)
    b1_2d = b1.reshape(C_, 1).astype(jnp.float32)
    b2_2d = b2.reshape(C2, 1).astype(jnp.float32)

    kernel = functools.partial(_sppf_kernel, H=H, W=W, k=k)

    itemsize = x.dtype.itemsize
    cost = pl.CostEstimate(
        flops=int(2 * N * HW * (C_ * C1 + C2 * 4 * C_)      # the two 1x1 convs
                  + 3 * 4 * (k // 2) * N * C_ * HW),         # separable pool maxes
        transcendentals=int(N * HW * (C_ + C2)),             # SiLU sigmoids
        bytes_accessed=int((N * C1 * HW + N * C2 * HW) * itemsize
                           + (w1f.size + w2f.size + b1_2d.size + b2_2d.size) * 4),
    )

    out2d = pl.pallas_call(
        kernel,
        out_shape=jax.ShapeDtypeStruct((N, C2, HW), x.dtype),
        grid=(N,),
        in_specs=[
            pl.BlockSpec((None, C1, HW), lambda n: (n, 0, 0)),  # x (lane-dense)
            pl.BlockSpec((C_, C1), lambda n: (0, 0)),           # w1 (replicated)
            pl.BlockSpec((C_, 1), lambda n: (0, 0)),            # b1
            pl.BlockSpec((C2, 4 * C_), lambda n: (0, 0)),       # w2
            pl.BlockSpec((C2, 1), lambda n: (0, 0)),            # b2
        ],
        out_specs=pl.BlockSpec((None, C2, HW), lambda n: (n, 0, 0)),
        compiler_params=pltpu.CompilerParams(
            dimension_semantics=("parallel",),     # megacore sharding on v7x for N>=2
            vmem_limit_bytes=32 * 1024 * 1024,     # <= default scoped limit everywhere
        ),
        cost_estimate=cost,
    )(x2d, w1f, b1_2d, w2f, b2_2d)

    return out2d.reshape(N, C2, H, W)


# ----------------------------- pure-JAX reference ----------------------------
def sppf_ref(x, w1_raw, bn1, w2_raw, bn2, k=5, eps=1e-5):
    """Reference matching PyTorch SPPF in eval mode (un-folded BN)."""
    def conv_bn_silu(inp, w, bn):
        gamma, beta, mean, var = bn
        y = jnp.einsum('oc,nchw->nohw', w, inp)
        y = (gamma[None, :, None, None] * (y - mean[None, :, None, None])
             / jnp.sqrt(var[None, :, None, None] + eps) + beta[None, :, None, None])
        return jax.nn.silu(y)

    def maxpool(inp):
        p = k // 2
        return jax.lax.reduce_window(
            inp, -jnp.inf, jax.lax.max,
            window_dimensions=(1, 1, k, k),
            window_strides=(1, 1, 1, 1),
            padding=((0, 0), (0, 0), (p, p), (p, p)))

    x1 = conv_bn_silu(x, w1_raw, bn1)
    y1 = maxpool(x1)
    y2 = maxpool(y1)
    y3 = maxpool(y2)
    return conv_bn_silu(jnp.concatenate([x1, y1, y2, y3], axis=1), w2_raw, bn2)


if __name__ == "__main__":
    key = jax.random.PRNGKey(0)
    N, C1, H, W = 2, 4, 16, 16
    C_ = C1 // 2     # SPPF hidden channels
    C2 = 4
    k = 5

    ks = jax.random.split(key, 11)
    x = jax.random.normal(ks[0], (N, C1, H, W), dtype=jnp.float32)
    w1_raw = jax.random.normal(ks[1], (C_, C1), dtype=jnp.float32) * 0.5
    w2_raw = jax.random.normal(ks[2], (C2, 4 * C_), dtype=jnp.float32) * 0.5
    bn1 = (jax.random.normal(ks[3], (C_,)) * 0.1 + 1.0,                       # gamma
           jax.random.normal(ks[4], (C_,)) * 0.1,                             # beta
           jax.random.normal(ks[5], (C_,)) * 0.1,                             # running mean
           jax.random.uniform(ks[6], (C_,), minval=0.5, maxval=1.5))          # running var
    bn2 = (jax.random.normal(ks[7], (C2,)) * 0.1 + 1.0,
           jax.random.normal(ks[8], (C2,)) * 0.1,
           jax.random.normal(ks[9], (C2,)) * 0.1,
           jax.random.uniform(ks[10], (C2,), minval=0.5, maxval=1.5))

    # Fold eval-mode BN into the 1x1 convs (training-mode batch stats not modeled).
    w1f, b1f = fold_conv_bn(w1_raw, *bn1)
    w2f, b2f = fold_conv_bn(w2_raw, *bn2)

    out = sppf(x, w1f, b1f, w2f, b2f, k=k)
    out = jax.block_until_ready(out)

    ref = sppf_ref(x, w1_raw, bn1, w2_raw, bn2, k=k)
    assert out.shape == (N, C2, H, W), out.shape
    err = float(jnp.max(jnp.abs(out - ref)))
    assert jnp.allclose(out, ref, atol=1e-3, rtol=1e-3), f"max abs err {err}"
    print("KERNEL_OK")
</pallas_src>

<mosaic_0001>
module attributes {stable_mosaic.version = 11 : i64} {
  func.func @_sppf_kernel(%arg0: i32, %arg1: memref<1x4x256xf32, #tpu.memory_space<vmem>>, %arg2: memref<2x4xf32, #tpu.memory_space<vmem>>, %arg3: memref<2x1xf32, #tpu.memory_space<vmem>>, %arg4: memref<4x8xf32, #tpu.memory_space<vmem>>, %arg5: memref<4x1xf32, #tpu.memory_space<vmem>>, %arg6: memref<1x4x256xf32, #tpu.memory_space<vmem>>) attributes {dimension_semantics = [#tpu.dimension_semantics<parallel>], iteration_bounds = array<i64: 2>, scalar_prefetch = 0 : i64, scratch_operands = 0 : i64, tpu.core_type = #tpu.core_type<tc>, window_params = [{transform_indices = @transform_0, window_bounds = array<i64: 1, 4, 256>}, {pipeline_mode = #tpu.pipeline_mode<synchronous>, transform_indices = @transform_1, window_bounds = array<i64: 2, 4>}, {pipeline_mode = #tpu.pipeline_mode<synchronous>, transform_indices = @transform_2, window_bounds = array<i64: 2, 1>}, {pipeline_mode = #tpu.pipeline_mode<synchronous>, transform_indices = @transform_3, window_bounds = array<i64: 4, 8>}, {pipeline_mode = #tpu.pipeline_mode<synchronous>, transform_indices = @transform_4, window_bounds = array<i64: 4, 1>}, {transform_indices = @transform_5, window_bounds = array<i64: 1, 4, 256>}]} {
    %c0 = arith.constant 0 : index
    %c0_0 = arith.constant 0 : index
    %c0_1 = arith.constant 0 : index
    %0 = vector.load %arg1[%c0, %c0_0, %c0_1] : memref<1x4x256xf32, #tpu.memory_space<vmem>>, vector<1x4x256xf32>
    %1 = vector.shape_cast %0 : vector<1x4x256xf32> to vector<4x256xf32>
    %c0_2 = arith.constant 0 : index
    %c0_3 = arith.constant 0 : index
    %2 = vector.load %arg2[%c0_2, %c0_3] : memref<2x4xf32, #tpu.memory_space<vmem>>, vector<2x4xf32>
    %cst = arith.constant dense<0.000000e+00> : vector<2x256xf32>
    %3 = tpu.matmul %2, %1, %cst {dimension_numbers = #tpu.dot_dimension_numbers<[1], [0], [0], [1], [0, 0, 1, 1], [], []>} : vector<2x4xf32>, vector<4x256xf32>, vector<2x256xf32> -> vector<2x256xf32>
    %c0_4 = arith.constant 0 : index
    %c0_5 = arith.constant 0 : index
    %4 = vector.load %arg3[%c0_4, %c0_5] : memref<2x1xf32, #tpu.memory_space<vmem>>, vector<2x1xf32>
    %5 = vector.broadcast %4 : vector<2x1xf32> to vector<2x256xf32>
    %6 = arith.addf %3, %5 : vector<2x256xf32>
    %cst_6 = arith.constant 0.000000e+00 : f32
    %7 = vector.broadcast %cst_6 : f32 to vector<2x256xf32>
    %8 = arith.subf %7, %6 : vector<2x256xf32>
    %9 = math.exp %8 : vector<2x256xf32>
    %cst_7 = arith.constant 1.000000e+00 : f32
    %10 = vector.broadcast %cst_7 : f32 to vector<2x256xf32>
    %11 = arith.addf %10, %9 : vector<2x256xf32>
    %cst_8 = arith.constant 1.000000e+00 : f32
    %12 = vector.broadcast %cst_8 : f32 to vector<2x256xf32>
    %13 = arith.divf %12, %11 : vector<2x256xf32>
    %14 = arith.mulf %6, %13 : vector<2x256xf32>
    %15 = tpu.iota {dimensions = array<i32: 1>} : vector<2x256xi32>
    %c16_i32 = arith.constant 16 : i32
    %c0_i32 = arith.constant 0 : i32
    %16 = arith.cmpi eq, %c16_i32, %c0_i32 : i32
    %c1_i32 = arith.constant 1 : i32
    %17 = arith.select %16, %c1_i32, %c16_i32 : i32
    %18 = vector.broadcast %17 : i32 to vector<2x256xi32>
    %19 = arith.remsi %15, %18 : vector<2x256xi32>
    %c0_i32_9 = arith.constant 0 : i32
    %20 = vector.broadcast %c0_i32_9 : i32 to vector<2x256xi32>
    %21 = arith.cmpi ne, %19, %20 : vector<2x256xi32>
    %c0_i32_10 = arith.constant 0 : i32
    %22 = vector.broadcast %c0_i32_10 : i32 to vector<2x256xi32>
    %23 = arith.cmpi slt, %19, %22 : vector<2x256xi32>
    %c0_i32_11 = arith.constant 0 : i32
    %24 = arith.cmpi slt, %17, %c0_i32_11 : i32
    %25 = vector.broadcast %24 : i1 to vector<2x256xi1>
    %26 = vector.broadcast %25 : vector<2x256xi1> to vector<2x256xi1>
    %27 = arith.xori %23, %26 : vector<2x256xi1>
    %28 = arith.andi %27, %21 : vector<2x256xi1>
    %29 = vector.broadcast %17 : i32 to vector<2x256xi32>
    %30 = arith.addi %19, %29 : vector<2x256xi32>
    %31 = arith.select %28, %30, %19 : vector<2x256xi1>, vector<2x256xi32>
    %c1_i32_12 = arith.constant 1 : i32
    %32 = vector.broadcast %c1_i32_12 : i32 to vector<2x256xi32>
    %33 = arith.addi %31, %32 : vector<2x256xi32>
    %c16_i32_13 = arith.constant 16 : i32
    %34 = vector.broadcast %c16_i32_13 : i32 to vector<2x256xi32>
    %35 = arith.cmpi slt, %33, %34 : vector<2x256xi32>
    %c2_i32 = arith.constant 2 : i32
    %36 = vector.broadcast %c2_i32 : i32 to vector<2x256xi32>
    %37 = arith.addi %31, %36 : vector<2x256xi32>
    %c16_i32_14 = arith.constant 16 : i32
    %38 = vector.broadcast %c16_i32_14 : i32 to vector<2x256xi32>
    %39 = arith.cmpi slt, %37, %38 : vector<2x256xi32>
    %c1_i32_15 = arith.constant 1 : i32
    %40 = vector.broadcast %c1_i32_15 : i32 to vector<2x256xi32>
    %41 = arith.subi %31, %40 : vector<2x256xi32>
    %c0_i32_16 = arith.constant 0 : i32
    %42 = vector.broadcast %c0_i32_16 : i32 to vector<2x256xi32>
    %43 = arith.cmpi sge, %41, %42 : vector<2x256xi32>
    %c2_i32_17 = arith.constant 2 : i32
    %44 = vector.broadcast %c2_i32_17 : i32 to vector<2x256xi32>
    %45 = arith.subi %31, %44 : vector<2x256xi32>
    %c0_i32_18 = arith.constant 0 : i32
    %46 = vector.broadcast %c0_i32_18 : i32 to vector<2x256xi32>
    %47 = arith.cmpi sge, %45, %46 : vector<2x256xi32>
    %48 = vector.extract_strided_slice %14 {offsets = [0, 1], sizes = [2, 255], strides = [1, 1]} : vector<2x256xf32> to vector<2x255xf32>
    %cst_19 = arith.constant -3.40282347E+38 : f32
    %49 = vector.broadcast %cst_19 : f32 to vector<2x1xf32>
    %50 = tpu.concatenate %48, %49 in 1 : vector<2x255xf32>, vector<2x1xf32> -> vector<2x256xf32>
    %cst_20 = arith.constant -3.40282347E+38 : f32
    %51 = vector.broadcast %cst_20 : f32 to vector<2x256xf32>
    %52 = arith.select %35, %50, %51 : vector<2x256xi1>, vector<2x256xf32>
    %53 = arith.maximumf %14, %52 : vector<2x256xf32>
    %cst_21 = arith.constant -3.40282347E+38 : f32
    %54 = vector.broadcast %cst_21 : f32 to vector<2x1xf32>
    %55 = vector.extract_strided_slice %14 {offsets = [0, 0], sizes = [2, 255], strides = [1, 1]} : vector<2x256xf32> to vector<2x255xf32>
    %56 = tpu.concatenate %54, %55 in 1 : vector<2x1xf32>, vector<2x255xf32> -> vector<2x256xf32>
    %cst_22 = arith.constant -3.40282347E+38 : f32
    %57 = vector.broadcast %cst_22 : f32 to vector<2x256xf32>
    %58 = arith.select %43, %56, %57 : vector<2x256xi1>, vector<2x256xf32>
    %59 = arith.maximumf %53, %58 : vector<2x256xf32>
    %60 = vector.extract_strided_slice %14 {offsets = [0, 2], sizes = [2, 254], strides = [1, 1]} : vector<2x256xf32> to vector<2x254xf32>
    %cst_23 = arith.constant -3.40282347E+38 : f32
    %61 = vector.broadcast %cst_23 : f32 to vector<2x2xf32>
    %62 = tpu.concatenate %60, %61 in 1 : vector<2x254xf32>, vector<2x2xf32> -> vector<2x256xf32>
    %cst_24 = arith.constant -3.40282347E+38 : f32
    %63 = vector.broadcast %cst_24 : f32 to vector<2x256xf32>
    %64 = arith.select %39, %62, %63 : vector<2x256xi1>, vector<2x256xf32>
    %65 = arith.maximumf %59, %64 : vector<2x256xf32>
    %cst_25 = arith.constant -3.40282347E+38 : f32
    %66 = vector.broadcast %cst_25 : f32 to vector<2x2xf32>
    %67 = vector.extract_strided_slice %14 {offsets = [0, 0], sizes = [2, 254], strides = [1, 1]} : vector<2x256xf32> to vector<2x254xf32>
    %68 = tpu.concatenate %66, %67 in 1 : vector<2x2xf32>, vector<2x254xf32> -> vector<2x256xf32>
    %cst_26 = arith.constant -3.40282347E+38 : f32
    %69 = vector.broadcast %cst_26 : f32 to vector<2x256xf32>
    %70 = arith.select %47, %68, %69 : vector<2x256xi1>, vector<2x256xf32>
    %71 = arith.maximumf %65, %70 : vector<2x256xf32>
    %72 = vector.extract_strided_slice %71 {offsets = [0, 16], sizes = [2, 240], strides = [1, 1]} : vector<2x256xf32> to vector<2x240xf32>
    %cst_27 = arith.constant -3.40282347E+38 : f32
    %73 = vector.broadcast %cst_27 : f32 to vector<2x16xf32>
    %74 = tpu.concatenate %72, %73 in 1 : vector<2x240xf32>, vector<2x16xf32> -> vector<2x256xf32>
    %75 = arith.maximumf %71, %74 : vector<2x256xf32>
    %cst_28 = arith.constant -3.40282347E+38 : f32
    %76 = vector.broadcast %cst_28 : f32 to vector<2x16xf32>
    %77 = vector.extract_strided_slice %71 {offsets = [0, 0], sizes = [2, 240], strides = [1, 1]} : vector<2x256xf32> to vector<2x240xf32>
    %78 = tpu.concatenate %76, %77 in 1 : vector<2x16xf32>, vector<2x240xf32> -> vector<2x256xf32>
    %79 = arith.maximumf %75, %78 : vector<2x256xf32>
    %80 = vector.extract_strided_slice %71 {offsets = [0, 32], sizes = [2, 224], strides = [1, 1]} : vector<2x256xf32> to vector<2x224xf32>
    %cst_29 = arith.constant -3.40282347E+38 : f32
    %81 = vector.broadcast %cst_29 : f32 to vector<2x32xf32>
    %82 = tpu.concatenate %80, %81 in 1 : vector<2x224xf32>, vector<2x32xf32> -> vector<2x256xf32>
    %83 = arith.maximumf %79, %82 : vector<2x256xf32>
    %cst_30 = arith.constant -3.40282347E+38 : f32
    %84 = vector.broadcast %cst_30 : f32 to vector<2x32xf32>
    %85 = vector.extract_strided_slice %71 {offsets = [0, 0], sizes = [2, 224], strides = [1, 1]} : vector<2x256xf32> to vector<2x224xf32>
    %86 = tpu.concatenate %84, %85 in 1 : vector<2x32xf32>, vector<2x224xf32> -> vector<2x256xf32>
    %87 = arith.maximumf %83, %86 : vector<2x256xf32>
    %88 = vector.extract_strided_slice %87 {offsets = [0, 1], sizes = [2, 255], strides = [1, 1]} : vector<2x256xf32> to vector<2x255xf32>
    %cst_31 = arith.constant -3.40282347E+38 : f32
    %89 = vector.broadcast %cst_31 : f32 to vector<2x1xf32>
    %90 = tpu.concatenate %88, %89 in 1 : vector<2x255xf32>, vector<2x1xf32> -> vector<2x256xf32>
    %cst_32 = arith.constant -3.40282347E+38 : f32
    %91 = vector.broadcast %cst_32 : f32 to vector<2x256xf32>
    %92 = arith.select %35, %90, %91 : vector<2x256xi1>, vector<2x256xf32>
    %93 = arith.maximumf %87, %92 : vector<2x256xf32>
    %cst_33 = arith.constant -3.40282347E+38 : f32
    %94 = vector.broadcast %cst_33 : f32 to vector<2x1xf32>
    %95 = vector.extract_strided_slice %87 {offsets = [0, 0], sizes = [2, 255], strides = [1, 1]} : vector<2x256xf32> to vector<2x255xf32>
    %96 = tpu.concatenate %94, %95 in 1 : vector<2x1xf32>, vector<2x255xf32> -> vector<2x256xf32>
    %cst_34 = arith.constant -3.40282347E+38 : f32
    %97 = vector.broadcast %cst_34 : f32 to vector<2x256xf32>
    %98 = arith.select %43, %96, %97 : vector<2x256xi1>, vector<2x256xf32>
    %99 = arith.maximumf %93, %98 : vector<2x256xf32>
    %100 = vector.extract_strided_slice %87 {offsets = [0, 2], sizes = [2, 254], strides = [1, 1]} : vector<2x256xf32> to vector<2x254xf32>
    %cst_35 = arith.constant -3.40282347E+38 : f32
    %101 = vector.broadcast %cst_35 : f32 to vector<2x2xf32>
    %102 = tpu.concatenate %100, %101 in 1 : vector<2x254xf32>, vector<2x2xf32> -> vector<2x256xf32>
    %cst_36 = arith.constant -3.40282347E+38 : f32
    %103 = vector.broadcast %cst_36 : f32 to vector<2x256xf32>
    %104 = arith.select %39, %102, %103 : vector<2x256xi1>, vector<2x256xf32>
    %105 = arith.maximumf %99, %104 : vector<2x256xf32>
    %cst_37 = arith.constant -3.40282347E+38 : f32
    %106 = vector.broadcast %cst_37 : f32 to vector<2x2xf32>
    %107 = vector.extract_strided_slice %87 {offsets = [0, 0], sizes = [2, 254], strides = [1, 1]} : vector<2x256xf32> to vector<2x254xf32>
    %108 = tpu.concatenate %106, %107 in 1 : vector<2x2xf32>, vector<2x254xf32> -> vector<2x256xf32>
    %cst_38 = arith.constant -3.40282347E+38 : f32
    %109 = vector.broadcast %cst_38 : f32 to vector<2x256xf32>
    %110 = arith.select %47, %108, %109 : vector<2x256xi1>, vector<2x256xf32>
    %111 = arith.maximumf %105, %110 : vector<2x256xf32>
    %112 = vector.extract_strided_slice %111 {offsets = [0, 16], sizes = [2, 240], strides = [1, 1]} : vector<2x256xf32> to vector<2x240xf32>
    %cst_39 = arith.constant -3.40282347E+38 : f32
    %113 = vector.broadcast %cst_39 : f32 to vector<2x16xf32>
    %114 = tpu.concatenate %112, %113 in 1 : vector<2x240xf32>, vector<2x16xf32> -> vector<2x256xf32>
    %115 = arith.maximumf %111, %114 : vector<2x256xf32>
    %cst_40 = arith.constant -3.40282347E+38 : f32
    %116 = vector.broadcast %cst_40 : f32 to vector<2x16xf32>
    %117 = vector.extract_strided_slice %111 {offsets = [0, 0], sizes = [2, 240], strides = [1, 1]} : vector<2x256xf32> to vector<2x240xf32>
    %118 = tpu.concatenate %116, %117 in 1 : vector<2x16xf32>, vector<2x240xf32> -> vector<2x256xf32>
    %119 = arith.maximumf %115, %118 : vector<2x256xf32>
    %120 = vector.extract_strided_slice %111 {offsets = [0, 32], sizes = [2, 224], strides = [1, 1]} : vector<2x256xf32> to vector<2x224xf32>
    %cst_41 = arith.constant -3.40282347E+38 : f32
    %121 = vector.broadcast %cst_41 : f32 to vector<2x32xf32>
    %122 = tpu.concatenate %120, %121 in 1 : vector<2x224xf32>, vector<2x32xf32> -> vector<2x256xf32>
    %123 = arith.maximumf %119, %122 : vector<2x256xf32>
    %cst_42 = arith.constant -3.40282347E+38 : f32
    %124 = vector.broadcast %cst_42 : f32 to vector<2x32xf32>
    %125 = vector.extract_strided_slice %111 {offsets = [0, 0], sizes = [2, 224], strides = [1, 1]} : vector<2x256xf32> to vector<2x224xf32>
    %126 = tpu.concatenate %124, %125 in 1 : vector<2x32xf32>, vector<2x224xf32> -> vector<2x256xf32>
    %127 = arith.maximumf %123, %126 : vector<2x256xf32>
    %128 = vector.extract_strided_slice %127 {offsets = [0, 1], sizes = [2, 255], strides = [1, 1]} : vector<2x256xf32> to vector<2x255xf32>
    %cst_43 = arith.constant -3.40282347E+38 : f32
    %129 = vector.broadcast %cst_43 : f32 to vector<2x1xf32>
    %130 = tpu.concatenate %128, %129 in 1 : vector<2x255xf32>, vector<2x1xf32> -> vector<2x256xf32>
    %cst_44 = arith.constant -3.40282347E+38 : f32
    %131 = vector.broadcast %cst_44 : f32 to vector<2x256xf32>
    %132 = arith.select %35, %130, %131 : vector<2x256xi1>, vector<2x256xf32>
    %133 = arith.maximumf %127, %132 : vector<2x256xf32>
    %cst_45 = arith.constant -3.40282347E+38 : f32
    %134 = vector.broadcast %cst_45 : f32 to vector<2x1xf32>
    %135 = vector.extract_strided_slice %127 {offsets = [0, 0], sizes = [2, 255], strides = [1, 1]} : vector<2x256xf32> to vector<2x255xf32>
    %136 = tpu.concatenate %134, %135 in 1 : vector<2x1xf32>, vector<2x255xf32> -> vector<2x256xf32>
    %cst_46 = arith.constant -3.40282347E+38 : f32
    %137 = vector.broadcast %cst_46 : f32 to vector<2x256xf32>
    %138 = arith.select %43, %136, %137 : vector<2x256xi1>, vector<2x256xf32>
    %139 = arith.maximumf %133, %138 : vector<2x256xf32>
    %140 = vector.extract_strided_slice %127 {offsets = [0, 2], sizes = [2, 254], strides = [1, 1]} : vector<2x256xf32> to vector<2x254xf32>
    %cst_47 = arith.constant -3.40282347E+38 : f32
    %141 = vector.broadcast %cst_47 : f32 to vector<2x2xf32>
    %142 = tpu.concatenate %140, %141 in 1 : vector<2x254xf32>, vector<2x2xf32> -> vector<2x256xf32>
    %cst_48 = arith.constant -3.40282347E+38 : f32
    %143 = vector.broadcast %cst_48 : f32 to vector<2x256xf32>
    %144 = arith.select %39, %142, %143 : vector<2x256xi1>, vector<2x256xf32>
    %145 = arith.maximumf %139, %144 : vector<2x256xf32>
    %cst_49 = arith.constant -3.40282347E+38 : f32
    %146 = vector.broadcast %cst_49 : f32 to vector<2x2xf32>
    %147 = vector.extract_strided_slice %127 {offsets = [0, 0], sizes = [2, 254], strides = [1, 1]} : vector<2x256xf32> to vector<2x254xf32>
    %148 = tpu.concatenate %146, %147 in 1 : vector<2x2xf32>, vector<2x254xf32> -> vector<2x256xf32>
    %cst_50 = arith.constant -3.40282347E+38 : f32
    %149 = vector.broadcast %cst_50 : f32 to vector<2x256xf32>
    %150 = arith.select %47, %148, %149 : vector<2x256xi1>, vector<2x256xf32>
    %151 = arith.maximumf %145, %150 : vector<2x256xf32>
    %152 = vector.extract_strided_slice %151 {offsets = [0, 16], sizes = [2, 240], strides = [1, 1]} : vector<2x256xf32> to vector<2x240xf32>
    %cst_51 = arith.constant -3.40282347E+38 : f32
    %153 = vector.broadcast %cst_51 : f32 to vector<2x16xf32>
    %154 = tpu.concatenate %152, %153 in 1 : vector<2x240xf32>, vector<2x16xf32> -> vector<2x256xf32>
    %155 = arith.maximumf %151, %154 : vector<2x256xf32>
    %cst_52 = arith.constant -3.40282347E+38 : f32
    %156 = vector.broadcast %cst_52 : f32 to vector<2x16xf32>
    %157 = vector.extract_strided_slice %151 {offsets = [0, 0], sizes = [2, 240], strides = [1, 1]} : vector<2x256xf32> to vector<2x240xf32>
    %158 = tpu.concatenate %156, %157 in 1 : vector<2x16xf32>, vector<2x240xf32> -> vector<2x256xf32>
    %159 = arith.maximumf %155, %158 : vector<2x256xf32>
    %160 = vector.extract_strided_slice %151 {offsets = [0, 32], sizes = [2, 224], strides = [1, 1]} : vector<2x256xf32> to vector<2x224xf32>
    %cst_53 = arith.constant -3.40282347E+38 : f32
    %161 = vector.broadcast %cst_53 : f32 to vector<2x32xf32>
    %162 = tpu.concatenate %160, %161 in 1 : vector<2x224xf32>, vector<2x32xf32> -> vector<2x256xf32>
    %163 = arith.maximumf %159, %162 : vector<2x256xf32>
    %cst_54 = arith.constant -3.40282347E+38 : f32
    %164 = vector.broadcast %cst_54 : f32 to vector<2x32xf32>
    %165 = vector.extract_strided_slice %151 {offsets = [0, 0], sizes = [2, 224], strides = [1, 1]} : vector<2x256xf32> to vector<2x224xf32>
    %166 = tpu.concatenate %164, %165 in 1 : vector<2x32xf32>, vector<2x224xf32> -> vector<2x256xf32>
    %167 = arith.maximumf %163, %166 : vector<2x256xf32>
    %168 = tpu.concatenate %14, %87, %127, %167 in 0 : vector<2x256xf32>, vector<2x256xf32>, vector<2x256xf32>, vector<2x256xf32> -> vector<8x256xf32>
    %c0_55 = arith.constant 0 : index
    %c0_56 = arith.constant 0 : index
    %169 = vector.load %arg4[%c0_55, %c0_56] : memref<4x8xf32, #tpu.memory_space<vmem>>, vector<4x8xf32>
    %cst_57 = arith.constant dense<0.000000e+00> : vector<4x256xf32>
    %170 = tpu.matmul %169, %168, %cst_57 {dimension_numbers = #tpu.dot_dimension_numbers<[1], [0], [0], [1], [0, 0, 1, 1], [], []>} : vector<4x8xf32>, vector<8x256xf32>, vector<4x256xf32> -> vector<4x256xf32>
    %c0_58 = arith.constant 0 : index
    %c0_59 = arith.constant 0 : index
    %171 = vector.load %arg5[%c0_58, %c0_59] : memref<4x1xf32, #tpu.memory_space<vmem>>, vector<4x1xf32>
    %172 = vector.broadcast %171 : vector<4x1xf32> to vector<4x256xf32>
    %173 = arith.addf %170, %172 : vector<4x256xf32>
    %cst_60 = arith.constant 0.000000e+00 : f32
    %174 = vector.broadcast %cst_60 : f32 to vector<4x256xf32>
    %175 = arith.subf %174, %173 : vector<4x256xf32>
    %176 = math.exp %175 : vector<4x256xf32>
    %cst_61 = arith.constant 1.000000e+00 : f32
    %177 = vector.broadcast %cst_61 : f32 to vector<4x256xf32>
    %178 = arith.addf %177, %176 : vector<4x256xf32>
    %cst_62 = arith.constant 1.000000e+00 : f32
    %179 = vector.broadcast %cst_62 : f32 to vector<4x256xf32>
    %180 = arith.divf %179, %178 : vector<4x256xf32>
    %181 = arith.mulf %173, %180 : vector<4x256xf32>
    %c0_63 = arith.constant 0 : index
    %c0_64 = arith.constant 0 : index
    %c0_65 = arith.constant 0 : index
    %182 = vector.load %arg6[%c0_63, %c0_64, %c0_65] : memref<1x4x256xf32, #tpu.memory_space<vmem>>, vector<1x4x256xf32>
    %183 = vector.shape_cast %182 : vector<1x4x256xf32> to vector<4x256xf32>
    %184 = vector.shape_cast %181 : vector<4x256xf32> to vector<1x4x256xf32>
    tpu.vector_store %arg6[%c0_63, %c0_64, %c0_65], %184 {strides = array<i32>} : memref<1x4x256xf32, #tpu.memory_space<vmem>>, vector<1x4x256xf32>,
    return
  }
  func.func @transform_0(%arg0: i32) -> (i32, i32, i32) {
    %c0_i32 = arith.constant 0 : i32
    %c0_i32_0 = arith.constant 0 : i32
    %c0_i32_1 = arith.constant 0 : i32
    return %arg0, %c0_i32, %c0_i32_0 : i32, i32, i32
  }
  func.func @transform_1(%arg0: i32) -> (i32, i32) {
    %c0_i32 = arith.constant 0 : i32
    %c0_i32_0 = arith.constant 0 : i32
    %c0_i32_1 = arith.constant 0 : i32
    return %c0_i32, %c0_i32_0 : i32, i32
  }
  func.func @transform_2(%arg0: i32) -> (i32, i32) {
    %c0_i32 = arith.constant 0 : i32
    %c0_i32_0 = arith.constant 0 : i32
    %c0_i32_1 = arith.constant 0 : i32
    return %c0_i32, %c0_i32_0 : i32, i32
  }
  func.func @transform_3(%arg0: i32) -> (i32, i32) {
    %c0_i32 = arith.constant 0 : i32
    %c0_i32_0 = arith.constant 0 : i32
    %c0_i32_1 = arith.constant 0 : i32
    return %c0_i32, %c0_i32_0 : i32, i32
  }
  func.func @transform_4(%arg0: i32) -> (i32, i32) {
    %c0_i32 = arith.constant 0 : i32
    %c0_i32_0 = arith.constant 0 : i32
    %c0_i32_1 = arith.constant 0 : i32
    return %c0_i32, %c0_i32_0 : i32, i32
  }
  func.func @transform_5(%arg0: i32) -> (i32, i32, i32) {
    %c0_i32 = arith.constant 0 : i32
    %c0_i32_0 = arith.constant 0 : i32
    %c0_i32_1 = arith.constant 0 : i32
    return %arg0, %c0_i32, %c0_i32_0 : i32, i32, i32
  }
}

</mosaic_0001>

<bundles_post_ra>
// kernel: tpu_custom_call.1
= control target key start
LH: loop header
LB: loop body
LE: loop exit
PB: predicated region body
PF: predicated region fallthrough
CT: control target
= control target key end

     0   :  { %10 = vsyncpa [#allocation3], 0  ;;  %s1518_s0 = inlined_call_operand.hbm [shape: f32[2,4,256], index: 0, kind: input, shape index: {}]   ;;  %s1519_s1 = inlined_call_operand.vmem [shape: f32[2,4], index: 1, kind: input, shape index: {}]   ;;  %s1520_s2 = inlined_call_operand.vmem [shape: f32[2,1], index: 2, kind: input, shape index: {}]   ;;  %s1521_s3 = inlined_call_operand.vmem [shape: f32[4,8], index: 3, kind: input, shape index: {}]   ;;  %s1522_s4 = inlined_call_operand.vmem [shape: f32[4,1], index: 4, kind: input, shape index: {}]   ;;  %s1523_s5 = inlined_call_operand.hbm [shape: f32[2,4,256], index: 5, kind: output, shape index: {}]  }
   0x1   :  { %12 = vsyncpa [#allocation3 + $0x1], 0 }
   0x2   :  { %13 = vsyncpa [#allocation4], 0 }
   0x3   :  { %15 = vsyncpa [#allocation4 + $0x1], 0  ;;  %s1119_s18 = smov 0   ;;  %s1121_s19 = smov 0  }
   0x4   :  { %s1123_s20 = smov 0   ;;  %s1125_s21 = smov 0  }
   0x5 LB: > { %s1140_s22 = sadd.s32 4294967295, %s1075_s21   ;;  %s880_s23 = sadd.s32 4294967294, %s1075_s21   ;;  %s1075_s21 = sphi %s1125_s21, %s1541_s21   ;;  %s1071_s20 = sphi %s1123_s20, %s1540_s20   ;;  %s1067_s19 = sphi %s1121_s19, %s1539_s19   ;;  %s1063_s18 = sphi %s1119_s18, %s1538_s18  }
   0x6   : > { %s1144_s24 = sadd.s32 1, %s1075_s21   ;;  %s28_s25 = sadd.s32 1, %s1071_s20 }
   0x7   : > { %s25_s26 = ssub.s32 %s1075_s21, %s1144_s24  ;;  %p35_p0 = scmp.ne.s32.totalorder %s1071_s20, %s1067_s19 }
   0x8   : > { %p26_p1 = scmp.eq.s32.totalorder %s25_s26, 0  ;;  %p36_p2 = scmp.eq.s32.totalorder %s1075_s21, 0 }
   0x9   : > { %p41_p3 = scmp.ne.s32.totalorder %s1067_s19, %s1063_s18  ;;  %p42_p4 = scmp.eq.s32.totalorder %s1140_s22, 0 }
   0xa   : > { %s1156_s27 = scalar_select %p26_p1, %s1071_s20, %s28_s25  }
   0xb   : > { %p1158_p5 = por %p36_p2, %p35_p0  ;;  %p1162_p6 = por %p42_p4, %p41_p3 }
   0xc   : > { %p149_p7 = scmp.eq.s32.totalorder %s1140_s22, 1  ;;  %p155_p8 = scmp.eq.s32.totalorder %s880_s23, 1 }
   0xd   : > { %p916_p10 = scmp.lt.s32.totalorder %s1075_s21, 2  ;;  %s187_s7 = sand.u32 1, %s1071_s20  }
   0xe   : > { %p1169_p11 = por %p149_p7, %p35_p0  ;;  %p1173_p12 = por %p155_p8, %p41_p3 }
   0xf   : > { %s902_s8 = sshll.u32 %s1075_s21, 7  ;;  %s883_s9 = sshll.u32 %s187_s7, 3 }
  0x10   : > { %s1528_s30 = scalar_select %p1169_p11, 1, 0 }
  0x11   : > { %s1529_s6 = scalar_select %p1173_p12, 1, 0 }
  0x12   : > { %s1182_s12 = scalar_lea.hbm %s1518_s0, %s902_s8  ;;  %s191_s13 = scalar_lea.vmem [#allocation2], %s883_s9 }
  0x13   : > { %s199_s14 = sshll.u32 %s191_s13, 4  ;;  %p1186_p13 = pnand %p916_p10, %p1158_p5  ;;  %s1190_s14 = int_to_ptr.vmem [resolvable:$true] %s199_s14 }
  0x14   : > { %s188_s16 = scalar_lea.sflag [#allocation3], %s187_s7  ;;  %s979_s17 = scalar_lea.hbm %s1182_s12, 128 }
  0x15   : > { %p980_p2 = scmp.ne.s32.totalorder %s1182_s12, %s979_s17  ;;  %p981_p3 = pneg %p1186_p13 }
  0x16   : > { %s984_s26 = scalar_lea.hbm %s1518_s0, 256  ;;  %p985_p5 = scmp.lt.u32.totalorder %s1182_s12, %s1518_s0 }
  0x17   : > { %p982_p4 = pnand %p981_p3, %p980_p2  ;;  %p986_p8 = scmp.lt.u32.totalorder %s984_s26, %s979_s17 }
  0x18   : > { %p988_p9 = scmp.lt.u32.totalorder %s979_s17, %s1182_s12 }
  0x19   : > { %p983_p7 = pneg %p982_p4  ;;  %p987_p10 = por %p986_p8, %p985_p5 }
  0x1b   : > { %p989_p0 = por %p988_p9, %p987_p10 }
  0x1d   : > { %p990_p1 = pnand %p989_p0, %p983_p7 }
  0x1f   : > { %993 = shalt.err (!%p990_p1)
}
  0x20   : > { %s994_s7 = scalar_lea.vmem %s1190_s14, 128  ;;  %s1077_s9 = smov [#allocation2]  }
  0x21   : > { %p995_p2 = scmp.ne.s32.totalorder %s1190_s14, %s994_s7  ;;  %s999_s10 = sshll.u32 %s1077_s9, 4  ;;  %s1000_s10 = int_to_ptr.vmem [resolvable:$false] %s999_s10 }
  0x22   : > { %s1001_s11 = scalar_lea.vmem %s1000_s10, 256  ;;  %p1002_p11 = scmp.lt.s32.totalorder %s1190_s14, %s1000_s10 }
  0x23   : > { %p997_p4 = pnand %p995_p2, %p981_p3  ;;  %p1003_p5 = scmp.lt.s32.totalorder %s1001_s11, %s994_s7 }
  0x25   : > { %p998_p12 = pneg %p997_p4  ;;  %p1004_p8 = por %p1003_p5, %p1002_p11 }
  0x27   : > { %p1005_p9 = pnand %p1004_p8, %p998_p12 }
  0x29   : > { %1008 = shalt.err (!%p1005_p9)
}
  0x2a   : > { %911 = dma.hbm_to_vmem [thread:$0]  (!%p1186_p13), %s1182_s12, 128, %s1190_s14, %s188_s16  }
  0x2b   : > { %p1531_p0 = scmp.lt.s32.totalorder %s1075_s21, 3  ;;  %p1532_p1 = scmp.ge.s32.totalorder %s1075_s21, 1 }
  0x2d   : > { %p205_p3 = pnand %p1532_p1, %p1531_p0 }
  0x2e   : > { %s1224_s13 = sand.u32 (!%p205_p3), 1, %s1067_s19  }
  0x2f   : > { %208 = sbr.rel (%p205_p3) target bundleno = 1353 (0x549), region = 40  ;;  %s887_s17 = sshll.u32 (!%p205_p3), %s1224_s13, 3 }
  0x30   : > { %s211_s23 = scalar_lea.sflag (!%p205_p3), [#allocation3], %s1224_s13  ;;  %s214_s15 = scalar_lea.vmem (!%p205_p3), [#allocation2], %s887_s17 }
  0x36   : > { %1054 = dma.done.wait (%p1162_p6), %s211_s23, 128  }
  0x37   : > { %1056 = vsyncadd (%p1162_p6), %s211_s23, 4294967168  ;;  %v1078_v0 = vmov 0.0   ;;  %v1079_v1 = vmov 0   ;;  %v241_v2 = vld [vmem:[%s214_s15] sm:$0xff]  ;;  %vm1525_vm0 = vcmask 1043456   ;;  %vm251_vm1 = vcmask 31744  }
  0x38   : > { %324 = vmatprep.mubr.f32.mxu0 %v1078_v0  ;;  %960 = vset.pattern.permute.xlu0 %v1079_v1  ;;  %v243_v3 = vld [vmem:[%s1520_s2] sm:$0x3]  ;;  %v250_v4 = vcombine.high %v241_v2, %v241_v2  ;;  %s1080_s29 = smov 126   ;;  %s1081_s26 = smov 127   ;;  %v345_v23 = vlaneseq  ;;  %vm394_vm2 = vcmask 1039360   ;;  %vm407_vm3 = vcmask 7168  }
  0x39   : > { %769 = vmatprep.mubr.f32.mxu1 %v1078_v0  ;;  %961 = vset.pattern.permute.xlu1 %v1079_v1  ;;  %v242_v5 = vld [vmem:[%s1519_s1] sm:$0x3]  ;;  %s1082_s28 = smov 1   ;;  %s1083_s8 = smov 2   ;;  %vm420_vm8 = vcmask 1031168   ;;  %vm433_vm11 = vcmask 15360  }
  0x3a   : > { %246 = vperm.xlu0 %960, %v243_v3   ;;  %889 = vmatprep.subr.msk.mxu0 %vm1525_vm0, %v250_v4  ;;  %v346_v24 = vand.u32 127, %v345_v23  ;;  %s1084_s7 = smov 112   ;;  %s1085_s9 = smov 16   ;;  %vm448_vm14 = vcmask 916480   ;;  %vm459_vm15 = vcmask 130048  }
  0x3b   : > { %890 = vmatpush1.msk.msra.mxu0 %vm1525_vm0, %v241_v2  ;;  %s1086_s10 = smov 96   ;;  %s1087_s11 = smov 32   ;;  %vm481_vm0 = vcmask 261120  }
  0x3c   : > { %891 = vmatmul.mubr.msk.f32.vlgmr.msra.gmra.mrb[0].mxu0 %vm251_vm1, %v242_v5  ;;  %v347_v25 = vadd.s32 128, %v346_v24  ;;  %v352_v26 = vand.u32 15, %v346_v24  ;;  %vm470_vm1 = vcmask 785408   ;;  %s903_s16 = sshll.u32 %s1140_s22, 7  ;;  %s240_s25 = scalar_lea.vmem [#allocation5], %s887_s17 }
  0x3d   : > { %p1535_p11 = scmp.ne.s32.totalorder %s1528_s30, 0  ;;  %s1088_s22 = smov [#allocation5]  }
  0x3e   : > { %v359_v27 = vand.u32 15, %v347_v25  ;;  %v1262_v28 = vadd.s32 1, %v352_v26  ;;  %v1266_v32 = vadd.s32 4294967295, %v352_v26  ;;  %v1272_v34 = vadd.s32 2, %v352_v26  ;;  %s1013_s17 = sshll.u32 %s1088_s22, 4  ;;  %s1014_s17 = int_to_ptr.vmem [resolvable:$false] %s1013_s17 }
  0x3f   : > { %v1287_v44 = vadd.s32 4294967294, %v352_v26 }
  0x40   : > { %v1264_v29 = vadd.s32 1, %v359_v27  ;;  %v1268_v33 = vadd.s32 4294967295, %v359_v27  ;;  %vm374_vm4 = vcmp.lt.s32.totalorder %v1262_v28, 16  ;;  %v1274_v37 = vadd.s32 2, %v359_v27 }
  0x41   : > { %vm382_vm6 = vcmp.ge.s32.totalorder %v1266_v32, 0  ;;  %vm378_vm9 = vcmp.lt.s32.totalorder %v1272_v34, 16  ;;  %v1289_v45 = vadd.s32 4294967294, %v359_v27  ;;  %vm386_vm12 = vcmp.ge.s32.totalorder %v1287_v44, 0 }
  0x42   : > { %vm375_vm5 = vcmp.lt.s32.totalorder %v1264_v29, 16  ;;  %vm383_vm7 = vcmp.ge.s32.totalorder %v1268_v33, 0  ;;  %vm379_vm10 = vcmp.lt.s32.totalorder %v1274_v37, 16  ;;  %v695_v37 = vld [vmem:[%s1522_s4] sm:$0xf] }
  0x43   : > { %vm387_vm13 = vcmp.ge.s32.totalorder %v1289_v45, 0 }
  0xb9   : > { %v247_v6 = vpop.permute.xlu0 %246 }
 0x10f   : > { %v326_v7 = vpop.f32.mrb[0].mxu0 }
 0x110   : > { %v327_v8 = vadd.f32 %v326_v7, %v247_v6  ;;  %v328_v9 = vpop.f32.mrb[1].mxu0 }
 0x111   : > { %v329_v10 = vadd.f32 %v328_v9, %v247_v6 }
 0x112   : > { %v331_v11 = vsub.f32 0.0, %v327_v8 }
 0x113   : > { %v332_v12 = vsub.f32 0.0, %v329_v10 }
 0x114   : > { %v333_v13 = vmul.f32 1.442695, %v331_v11 }
 0x115   : > { %v335_v14 = vmul.f32 1.442695, %v332_v12 }
 0x116   : > { %963 = vpow2.f32 %v333_v13 }
 0x117   : > { %965 = vpow2.f32 %v335_v14 }
 0x120   : > { %v964_v15 = vpop.eup %963 }
 0x121   : > { %v966_v16 = vpop.eup %965  ;;  %v337_v17 = vadd.f32 1.0, %v964_v15 }
 0x122   : > { %v338_v18 = vadd.f32 1.0, %v966_v16 }
 0x123   : > { %967 = vrcp.f32 %v337_v17 }
 0x124   : > { %969 = vrcp.f32 %v338_v18 }
 0x12d   : > { %v968_v19 = vpop.eup %967 }
 0x12e   : > { %v1242_v20 = vmul.f32 %v968_v19, %v327_v8  ;;  %v970_v21 = vpop.eup %969 }
 0x12f   : > { %v1248_v22 = vmul.f32 %v970_v21, %v329_v10 }
 0x130   : > { %416 = vrot.lane.b32.xlu0 %v1242_v20, %s1080_s29  ;;  %390 = vrot.lane.b32.xlu1 %v1242_v20, %s1081_s26 }
 0x134   : > { %392 = vrot.lane.b32.xlu0 %v1248_v22, %s1081_s26  ;;  %403 = vrot.lane.b32.xlu1 %v1242_v20, %s1082_s28 }
 0x138   : > { %405 = vrot.lane.b32.xlu0 %v1248_v22, %s1082_s28  ;;  %418 = vrot.lane.b32.xlu1 %v1248_v22, %s1080_s29 }
 0x13c   : > { %431 = vrot.lane.b32.xlu0 %v1248_v22, %s1083_s8  ;;  %429 = vrot.lane.b32.xlu1 %v1242_v20, %s1083_s8 }
 0x1a2   : > { %v417_v30 = vpop.permute.xlu0 %416  ;;  %v391_v31 = vpop.permute.xlu1 %390 }
 0x1a6   : > { %v393_v35 = vpop.permute.xlu0 %392  ;;  %v404_v36 = vpop.permute.xlu1 %403 }
 0x1a7   : > { %v395_v38 = vsel %vm394_vm2, %v391_v31, %v393_v35  ;;  %v398_v39 = vsel %vm394_vm2, %v393_v35, -3.4028235e+38  ;;  %v411_v40 = vsel %vm407_vm3, -3.4028235e+38, %v404_v36 }
 0x1a8   : > { %v399_v41 = vsel %vm374_vm4, %v395_v38, -3.4028235e+38  ;;  %v400_v42 = vsel %vm375_vm5, %v398_v39, -3.4028235e+38  ;;  %v412_v47 = vsel %vm382_vm6, %v411_v40, -3.4028235e+38 }
 0x1a9   : > { %v401_v43 = vmax.f32 %v1242_v20, %v399_v41  ;;  %v402_v46 = vmax.f32 %v1248_v22, %v400_v42 }
 0x1aa   : > { %v406_v48 = vpop.permute.xlu0 %405  ;;  %v419_v49 = vpop.permute.xlu1 %418 }
 0x1ab   : > { %v414_v50 = vmax.f32 %v401_v43, %v412_v47  ;;  %v408_v51 = vsel %vm407_vm3, %v404_v36, %v406_v48  ;;  %v421_v52 = vsel %vm420_vm8, %v417_v30, %v419_v49  ;;  %v424_v53 = vsel %vm420_vm8, %v419_v49, -3.4028235e+38 }
 0x1ac   : > { %v413_v54 = vsel %vm383_vm7, %v408_v51, -3.4028235e+38  ;;  %v425_v55 = vsel %vm378_vm9, %v421_v52, -3.4028235e+38  ;;  %v426_v57 = vsel %vm379_vm10, %v424_v53, -3.4028235e+38 }
 0x1ad   : > { %v415_v56 = vmax.f32 %v402_v46, %v413_v54  ;;  %v427_v60 = vmax.f32 %v414_v50, %v425_v55 }
 0x1ae   : > { %v432_v58 = vpop.permute.xlu0 %431  ;;  %v430_v59 = vpop.permute.xlu1 %429 }
 0x1af   : > { %v428_v61 = vmax.f32 %v415_v56, %v426_v57  ;;  %v434_v62 = vsel %vm433_vm11, %v430_v59, %v432_v58  ;;  %v437_v63 = vsel %vm433_vm11, -3.4028235e+38, %v430_v59 }
 0x1b0   : > { %v438_v0 = vsel %vm386_vm12, %v437_v63, -3.4028235e+38  ;;  %v439_v1 = vsel %vm387_vm13, %v434_v62, -3.4028235e+38 }
 0x1b1   : > { %v440_v2 = vmax.f32 %v427_v60, %v438_v0  ;;  %v441_v3 = vmax.f32 %v428_v61, %v439_v1 }
 0x1b3   : > { %444 = vrot.lane.b32.xlu0 %v440_v2, %s1084_s7  ;;  %446 = vrot.lane.b32.xlu1 %v441_v3, %s1084_s7 }
 0x1b7   : > { %457 = vrot.lane.b32.xlu0 %v441_v3, %s1085_s9  ;;  %455 = vrot.lane.b32.xlu1 %v440_v2, %s1085_s9 }
 0x1bb   : > { %466 = vrot.lane.b32.xlu0 %v440_v2, %s1086_s10  ;;  %468 = vrot.lane.b32.xlu1 %v441_v3, %s1086_s10 }
 0x1bf   : > { %479 = vrot.lane.b32.xlu0 %v441_v3, %s1087_s11  ;;  %477 = vrot.lane.b32.xlu1 %v440_v2, %s1087_s11 }
 0x225   : > { %v445_v4 = vpop.permute.xlu0 %444  ;;  %v447_v5 = vpop.permute.xlu1 %446 }
 0x226   : > { %v449_v8 = vsel %vm448_vm14, %v445_v4, %v447_v5  ;;  %v452_v9 = vsel %vm448_vm14, %v447_v5, -3.4028235e+38 }
 0x227   : > { %v453_v12 = vmax.f32 %v440_v2, %v449_v8  ;;  %v454_v13 = vmax.f32 %v441_v3, %v452_v9 }
 0x229   : > { %v458_v6 = vpop.permute.xlu0 %457  ;;  %v456_v7 = vpop.permute.xlu1 %455 }
 0x22a   : > { %v460_v10 = vsel %vm459_vm15, %v456_v7, %v458_v6  ;;  %v463_v11 = vsel %vm459_vm15, -3.4028235e+38, %v456_v7 }
 0x22b   : > { %v464_v18 = vmax.f32 %v453_v12, %v463_v11  ;;  %v465_v19 = vmax.f32 %v454_v13, %v460_v10 }
 0x22d   : > { %v467_v14 = vpop.permute.xlu0 %466  ;;  %v469_v15 = vpop.permute.xlu1 %468 }
 0x22e   : > { %v471_v16 = vsel %vm470_vm1, %v467_v14, %v469_v15  ;;  %v474_v17 = vsel %vm470_vm1, %v469_v15, -3.4028235e+38 }
 0x22f   : > { %v475_v21 = vmax.f32 %v464_v18, %v471_v16  ;;  %v476_v23 = vmax.f32 %v465_v19, %v474_v17 }
 0x231   : > { %v480_v24 = vpop.permute.xlu0 %479  ;;  %v478_v25 = vpop.permute.xlu1 %477 }
 0x232   : > { %v482_v26 = vsel %vm481_vm0, %v478_v25, %v480_v24  ;;  %v485_v27 = vsel %vm481_vm0, -3.4028235e+38, %v478_v25 }
 0x233   : > { %v1328_v30 = vmax.f32 %v475_v21, %v485_v27  ;;  %v1330_v31 = vmax.f32 %v476_v23, %v482_v26 }
 0x235   : > { %490 = vrot.lane.b32.xlu0 %v1328_v30, %s1081_s26  ;;  %492 = vrot.lane.b32.xlu1 %v1330_v31, %s1081_s26 }
 0x239   : > { %504 = vrot.lane.b32.xlu0 %v1330_v31, %s1082_s28  ;;  %502 = vrot.lane.b32.xlu1 %v1328_v30, %s1082_s28 }
 0x23d   : > { %514 = vrot.lane.b32.xlu0 %v1328_v30, %s1080_s29  ;;  %516 = vrot.lane.b32.xlu1 %v1330_v31, %s1080_s29 }
 0x241   : > { %528 = vrot.lane.b32.xlu0 %v1330_v31, %s1083_s8  ;;  %526 = vrot.lane.b32.xlu1 %v1328_v30, %s1083_s8 }
 0x2a7   : > { %v491_v35 = vpop.permute.xlu0 %490  ;;  %v493_v36 = vpop.permute.xlu1 %492 }
 0x2a8   : > { %v494_v38 = vsel %vm394_vm2, %v491_v35, %v493_v36  ;;  %v497_v39 = vsel %vm394_vm2, %v493_v36, -3.4028235e+38 }
 0x2a9   : > { %v498_v46 = vsel %vm374_vm4, %v494_v38, -3.4028235e+38  ;;  %v499_v47 = vsel %vm375_vm5, %v497_v39, -3.4028235e+38 }
 0x2aa   : > { %v500_v52 = vmax.f32 %v1328_v30, %v498_v46  ;;  %v501_v53 = vmax.f32 %v1330_v31, %v499_v47 }
 0x2ab   : > { %v505_v40 = vpop.permute.xlu0 %504  ;;  %v503_v41 = vpop.permute.xlu1 %502 }
 0x2ac   : > { %v506_v42 = vsel %vm407_vm3, %v503_v41, %v505_v40  ;;  %v509_v43 = vsel %vm407_vm3, -3.4028235e+38, %v503_v41 }
 0x2ad   : > { %v510_v48 = vsel %vm382_vm6, %v509_v43, -3.4028235e+38  ;;  %v511_v49 = vsel %vm383_vm7, %v506_v42, -3.4028235e+38 }
 0x2ae   : > { %v512_v58 = vmax.f32 %v500_v52, %v510_v48  ;;  %v513_v59 = vmax.f32 %v501_v53, %v511_v49 }
 0x2af   : > { %v515_v50 = vpop.permute.xlu0 %514  ;;  %v517_v51 = vpop.permute.xlu1 %516 }
 0x2b0   : > { %v518_v54 = vsel %vm420_vm8, %v515_v50, %v517_v51  ;;  %v521_v55 = vsel %vm420_vm8, %v517_v51, -3.4028235e+38 }
 0x2b1   : > { %v522_v56 = vsel %vm378_vm9, %v518_v54, -3.4028235e+38  ;;  %v523_v57 = vsel %vm379_vm10, %v521_v55, -3.4028235e+38 }
 0x2b2   : > { %v524_v62 = vmax.f32 %v512_v58, %v522_v56  ;;  %v525_v63 = vmax.f32 %v513_v59, %v523_v57 }
 0x2b3   : > { %v529_v60 = vpop.permute.xlu0 %528  ;;  %v527_v61 = vpop.permute.xlu1 %526 }
 0x2b4   : > { %v530_v0 = vsel %vm433_vm11, %v527_v61, %v529_v60  ;;  %v533_v1 = vsel %vm433_vm11, -3.4028235e+38, %v527_v61 }
 0x2b5   : > { %v534_v2 = vsel %vm386_vm12, %v533_v1, -3.4028235e+38  ;;  %v535_v3 = vsel %vm387_vm13, %v530_v0, -3.4028235e+38 }
 0x2b6   : > { %v536_v4 = vmax.f32 %v524_v62, %v534_v2  ;;  %v537_v5 = vmax.f32 %v525_v63, %v535_v3 }
 0x2b8   : > { %540 = vrot.lane.b32.xlu0 %v536_v4, %s1084_s7  ;;  %542 = vrot.lane.b32.xlu1 %v537_v5, %s1084_s7 }
 0x2bc   : > { %552 = vrot.lane.b32.xlu0 %v537_v5, %s1085_s9  ;;  %550 = vrot.lane.b32.xlu1 %v536_v4, %s1085_s9 }
 0x2c0   : > { %560 = vrot.lane.b32.xlu0 %v536_v4, %s1086_s10  ;;  %562 = vrot.lane.b32.xlu1 %v537_v5, %s1086_s10 }
 0x2c4   : > { %572 = vrot.lane.b32.xlu0 %v537_v5, %s1087_s11  ;;  %570 = vrot.lane.b32.xlu1 %v536_v4, %s1087_s11 }
 0x32a   : > { %v541_v6 = vpop.permute.xlu0 %540  ;;  %v543_v7 = vpop.permute.xlu1 %542 }
 0x32b   : > { %v544_v10 = vsel %vm448_vm14, %v541_v6, %v543_v7  ;;  %v547_v11 = vsel %vm448_vm14, %v543_v7, -3.4028235e+38 }
 0x32c   : > { %v548_v14 = vmax.f32 %v536_v4, %v544_v10  ;;  %v549_v15 = vmax.f32 %v537_v5, %v547_v11 }
 0x32e   : > { %v553_v8 = vpop.permute.xlu0 %552  ;;  %v551_v9 = vpop.permute.xlu1 %550 }
 0x32f   : > { %v554_v12 = vsel %vm459_vm15, %v551_v9, %v553_v8  ;;  %v557_v13 = vsel %vm459_vm15, -3.4028235e+38, %v551_v9 }
 0x330   : > { %v558_v21 = vmax.f32 %v548_v14, %v557_v13  ;;  %v559_v23 = vmax.f32 %v549_v15, %v554_v12 }
 0x332   : > { %v561_v16 = vpop.permute.xlu0 %560  ;;  %v563_v17 = vpop.permute.xlu1 %562 }
 0x333   : > { %v564_v18 = vsel %vm470_vm1, %v561_v16, %v563_v17  ;;  %v567_v19 = vsel %vm470_vm1, %v563_v17, -3.4028235e+38 }
 0x334   : > { %v568_v24 = vmax.f32 %v558_v21, %v564_v18  ;;  %v569_v25 = vmax.f32 %v559_v23, %v567_v19 }
 0x336   : > { %v573_v26 = vpop.permute.xlu0 %572  ;;  %v571_v27 = vpop.permute.xlu1 %570 }
 0x337   : > { %v574_v35 = vsel %vm481_vm0, %v571_v27, %v573_v26  ;;  %v577_v36 = vsel %vm481_vm0, -3.4028235e+38, %v571_v27  ;;  %v672_v26 = vrot.slane %v1328_v30, 6 }
 0x338   : > { %v1390_v38 = vmax.f32 %v568_v24, %v577_v36  ;;  %v1392_v39 = vmax.f32 %v569_v25, %v574_v35  ;;  %v673_v25 = vrot.slane %v1330_v31, 6 }
 0x33a   : > { %582 = vrot.lane.b32.xlu0 %v1390_v38, %s1081_s26  ;;  %584 = vrot.lane.b32.xlu1 %v1392_v39, %s1081_s26  ;;  %v677_v36 = vrot.slane %v1392_v39, 4 }
 0x33e   : > { %596 = vrot.lane.b32.xlu0 %v1392_v39, %s1082_s28  ;;  %594 = vrot.lane.b32.xlu1 %v1390_v38, %s1082_s28 }
 0x342   : > { %606 = vrot.lane.b32.xlu0 %v1390_v38, %s1080_s29  ;;  %608 = vrot.lane.b32.xlu1 %v1392_v39, %s1080_s29  ;;  %s810_s29 = sshll.u32 %s240_s25, 4  ;;  %s1476_s29 = int_to_ptr.vmem [resolvable:$true] %s810_s29 }
 0x343   : > { %p1016_p7 = scmp.lt.s32.totalorder %s1476_s29, %s1014_s17 }
 0x346   : > { %620 = vrot.lane.b32.xlu0 %v1392_v39, %s1083_s8  ;;  %618 = vrot.lane.b32.xlu1 %v1390_v38, %s1083_s8  ;;  %s1474_s8 = scalar_lea.hbm %s1523_s5, %s903_s16 }
 0x3ac   : > { %v583_v40 = vpop.permute.xlu0 %582  ;;  %v585_v41 = vpop.permute.xlu1 %584 }
 0x3ad   : > { %v586_v42 = vsel %vm394_vm2, %v583_v40, %v585_v41  ;;  %v589_v43 = vsel %vm394_vm2, %v585_v41, -3.4028235e+38  ;;  %vm686_vm2 = vcmask 1041408   ;;  %v676_v40 = vrot.slane %v1390_v38, 4 }
 0x3ae   : > { %v590_v50 = vsel %vm374_vm4, %v586_v42, -3.4028235e+38  ;;  %v591_v51 = vsel %vm375_vm5, %v589_v43, -3.4028235e+38  ;;  %v687_v31 = vsel %vm686_vm2, %v1242_v20, %v672_v26  ;;  %vm1533_vm4 = vcmask 1043456  }
 0x3af   : > { %v592_v56 = vmax.f32 %v1390_v38, %v590_v50  ;;  %v593_v57 = vmax.f32 %v1392_v39, %v591_v51  ;;  %vm1534_vm5 = vmmov %vm1533_vm4  ;;  %v694_v38 = vld [vmem:[%s1521_s3] sm:$0xf] }
 0x3b0   : > { %v597_v46 = vpop.permute.xlu0 %596  ;;  %v595_v47 = vpop.permute.xlu1 %594 }
 0x3b1   : > { %v598_v48 = vsel %vm407_vm3, %v595_v47, %v597_v46  ;;  %v601_v49 = vsel %vm407_vm3, -3.4028235e+38, %v595_v47  ;;  %vm691_vm3 = vcmask 1045504   ;;  %v688_v47 = vsel %vm686_vm2, %v1248_v22, %v673_v25 }
 0x3b2   : > { %v602_v52 = vsel %vm382_vm6, %v601_v49, -3.4028235e+38  ;;  %v603_v53 = vsel %vm383_vm7, %v598_v48, -3.4028235e+38  ;;  %v690_v30 = vsel %vm1533_vm4, %v688_v47, %v677_v36  ;;  %v689_v48 = vsel %vm1534_vm5, %v687_v31, %v676_v40 }
 0x3b3   : > { %v604_v59 = vmax.f32 %v592_v56, %v602_v52  ;;  %v605_v60 = vmax.f32 %v593_v57, %v603_v53 }
 0x3b4   : > { %v607_v54 = vpop.permute.xlu0 %606  ;;  %v609_v55 = vpop.permute.xlu1 %608 }
 0x3b5   : > { %v610_v58 = vsel %vm420_vm8, %v607_v54, %v609_v55  ;;  %v613_v28 = vsel %vm420_vm8, %v609_v55, -3.4028235e+38 }
 0x3b6   : > { %v614_v29 = vsel %vm378_vm9, %v610_v58, -3.4028235e+38  ;;  %v615_v32 = vsel %vm379_vm10, %v613_v28, -3.4028235e+38 }
 0x3b7   : > { %v616_v62 = vmax.f32 %v604_v59, %v614_v29  ;;  %v617_v63 = vmax.f32 %v605_v60, %v615_v32 }
 0x3b8   : > { %v621_v33 = vpop.permute.xlu0 %620  ;;  %v619_v61 = vpop.permute.xlu1 %618 }
 0x3b9   : > { %v622_v0 = vsel %vm433_vm11, %v619_v61, %v621_v33  ;;  %v625_v1 = vsel %vm433_vm11, -3.4028235e+38, %v619_v61 }
 0x3ba   : > { %v626_v2 = vsel %vm386_vm12, %v625_v1, -3.4028235e+38  ;;  %v627_v34 = vsel %vm387_vm13, %v622_v0, -3.4028235e+38 }
 0x3bb   : > { %v628_v3 = vmax.f32 %v616_v62, %v626_v2  ;;  %v629_v4 = vmax.f32 %v617_v63, %v627_v34 }
 0x3bd   : > { %632 = vrot.lane.b32.xlu0 %v628_v3, %s1084_s7  ;;  %634 = vrot.lane.b32.xlu1 %v629_v4, %s1084_s7  ;;  %s796_s7 = scalar_lea.sflag [#allocation4], %s1224_s13 }
 0x3c1   : > { %644 = vrot.lane.b32.xlu0 %v629_v4, %s1085_s9  ;;  %642 = vrot.lane.b32.xlu1 %v628_v3, %s1085_s9  ;;  %s1009_s9 = scalar_lea.vmem %s1476_s29, 128 }
 0x3c2   : > { %p1010_p6 = scmp.ne.s32.totalorder %s1476_s29, %s1009_s9 }
 0x3c4   : > { %p1011_p12 = pnand %p1010_p6, %p1535_p11 }
 0x3c5   : > { %652 = vrot.lane.b32.xlu0 %v628_v3, %s1086_s10  ;;  %654 = vrot.lane.b32.xlu1 %v629_v4, %s1086_s10  ;;  %s1015_s10 = scalar_lea.vmem %s1014_s17, 256 }
 0x3c6   : > { %p1012_p13 = pneg %p1011_p12  ;;  %p1017_p10 = scmp.lt.s32.totalorder %s1015_s10, %s1009_s9 }
 0x3c8   : > { %p1018_p2 = por %p1017_p10, %p1016_p7 }
 0x3c9   : > { %664 = vrot.lane.b32.xlu0 %v629_v4, %s1087_s11  ;;  %662 = vrot.lane.b32.xlu1 %v628_v3, %s1087_s11 }
 0x3ca   : > { %p1019_p4 = pnand %p1018_p2, %p1012_p13 }
 0x3cd   : > { %698 = vperm.xlu1 %961, %v695_v37  }
 0x42f   : > { %v633_v44 = vpop.permute.xlu0 %632  ;;  %v635_v45 = vpop.permute.xlu1 %634 }
 0x430   : > { %v636_v7 = vsel %vm448_vm14, %v633_v44, %v635_v45  ;;  %v639_v8 = vsel %vm448_vm14, %v635_v45, -3.4028235e+38 }
 0x431   : > { %v640_v11 = vmax.f32 %v628_v3, %v636_v7  ;;  %v641_v12 = vmax.f32 %v629_v4, %v639_v8 }
 0x433   : > { %v645_v5 = vpop.permute.xlu0 %644  ;;  %v643_v6 = vpop.permute.xlu1 %642 }
 0x434   : > { %v646_v9 = vsel %vm459_vm15, %v643_v6, %v645_v5  ;;  %v649_v10 = vsel %vm459_vm15, -3.4028235e+38, %v643_v6 }
 0x435   : > { %v650_v17 = vmax.f32 %v640_v11, %v649_v10  ;;  %v651_v18 = vmax.f32 %v641_v12, %v646_v9 }
 0x437   : > { %v653_v13 = vpop.permute.xlu0 %652  ;;  %v655_v14 = vpop.permute.xlu1 %654 }
 0x438   : > { %v656_v15 = vsel %vm470_vm1, %v653_v13, %v655_v14  ;;  %v659_v16 = vsel %vm470_vm1, %v655_v14, -3.4028235e+38 }
 0x439   : > { %v660_v19 = vmax.f32 %v650_v17, %v656_v15  ;;  %v661_v21 = vmax.f32 %v651_v18, %v659_v16 }
 0x43b   : > { %v665_v23 = vpop.permute.xlu0 %664  ;;  %v663_v24 = vpop.permute.xlu1 %662 }
 0x43c   : > { %v666_v27 = vsel %vm481_vm0, %v663_v24, %v665_v23  ;;  %v669_v35 = vsel %vm481_vm0, -3.4028235e+38, %v663_v24  ;;  %vm701_vm0 = vcmask 64512  }
 0x43d   : > { %v670_v41 = vmax.f32 %v660_v19, %v669_v35  ;;  %v671_v42 = vmax.f32 %v661_v21, %v666_v27 }
 0x43f   : > { %v682_v43 = vrot.slane %v670_v41, 2  ;;  %v683_v46 = vrot.slane %v671_v42, 2 }
 0x441   : > { %v693_v49 = vsel %vm691_vm3, %v690_v30, %v683_v46  ;;  %v692_v50 = vsel %vm691_vm3, %v689_v48, %v682_v43 }
 0x442   : > { %705 = vmatprep.subr.mxu1 %v693_v49 }
 0x443   : > { %706 = vmatpush1.msra.mxu1 %v692_v50 }
 0x444   : > { %896 = vmatmul.mubr.msk.f32.vlgmr.msra.gmra.mrb[0].mxu1 %vm701_vm0, %v694_v38 }
 0x44c   : > { %v699_v39 = vpop.permute.xlu1 %698 }
 0x517   : > { %v771_v51 = vpop.f32.mrb[0].mxu1 }
 0x518   : > { %v772_v22 = vadd.f32 %v771_v51, %v699_v39  ;;  %v773_v52 = vpop.f32.mrb[1].mxu1 }
 0x519   : > { %v774_v53 = vadd.f32 %v773_v52, %v699_v39 }
 0x51a   : > { %v776_v20 = vsub.f32 0.0, %v772_v22 }
 0x51b   : > { %v777_v54 = vsub.f32 0.0, %v774_v53 }
 0x51c   : > { %v778_v55 = vmul.f32 1.442695, %v776_v20 }
 0x51d   : > { %v780_v56 = vmul.f32 1.442695, %v777_v54 }
 0x51e   : > { %971 = vpow2.f32 %v778_v55 }
 0x51f   : > { %973 = vpow2.f32 %v780_v56 }
 0x528   : > { %v972_v57 = vpop.eup %971 }
 0x529   : > { %v974_v58 = vpop.eup %973  ;;  %v782_v28 = vadd.f32 1.0, %v972_v57 }
 0x52a   : > { %v783_v29 = vadd.f32 1.0, %v974_v58 }
 0x52b   : > { %975 = vrcp.f32 %v782_v28 }
 0x52c   : > { %977 = vrcp.f32 %v783_v29 }
 0x535   : > { %v976_v32 = vpop.eup %975 }
 0x536   : > { %v978_v59 = vpop.eup %977  ;;  %v788_v60 = vmul.f32 %v976_v32, %v772_v22 }
 0x537   : > { %v789_v33 = vmul.f32 %v978_v59, %v774_v53 }
 0x539   : > { %v792_v61 = vcombine.low %v788_v60, %v789_v33 }
 0x53b   : > { %794 = vst [vmem:[%s240_s25] sm:$0xff] %v792_v61 }
 0x53c   : > { %1022 = shalt.err (!%p1019_p4)
}
 0x53d   : > { %s1023_s13 = scalar_lea.hbm %s1474_s8, 128  ;;  %s1027_s15 = scalar_lea.hbm %s1523_s5, 256 }
 0x53e   : > { %p1024_p5 = scmp.ne.s32.totalorder %s1474_s8, %s1023_s13  ;;  %p1028_p0 = scmp.lt.u32.totalorder %s1474_s8, %s1523_s5 }
 0x53f   : > { %p1029_p1 = scmp.lt.u32.totalorder %s1027_s15, %s1023_s13  ;;  %p1031_p6 = scmp.lt.u32.totalorder %s1023_s13, %s1474_s8 }
 0x540   : > { %p1025_p8 = pnand %p1024_p5, %p1535_p11 }
 0x541   : > { %p1030_p3 = por %p1029_p1, %p1028_p0 }
 0x542   : > { %p1026_p9 = pneg %p1025_p8 }
 0x543   : > { %p1032_p12 = por %p1031_p6, %p1030_p3 }
 0x545   : > { %p1033_p13 = pnand %p1032_p12, %p1026_p9 }
 0x547   : > { %1036 = shalt.err (!%p1033_p13)
}
 0x548   : > { %906 = dma.vmem_to_hbm [thread:$0]  (%p1535_p11), %s1476_s29, 128, %s1474_s8, %s796_s7  }
 0x549 PF: > { %s822_s16 = sand.u32 1, %s1063_s18   ;;  %p1536_p7 = scmp.ne.s32.totalorder %s1529_s6, 0 }
 0x54a   : > { %p1537_p10 = scmp.ge.s32.totalorder %s1075_s21, 2  ;;  %s823_s25 = scalar_lea.sflag [#allocation4], %s822_s16 }
 0x54c   : > { %p913_p2 = pnand %p1537_p10, %p1536_p7 }
 0x54e   : > { %1058 = dma.done.wait (!%p913_p2), %s823_s25, 128  }
 0x54f   : > { %1060 = vsyncadd (!%p913_p2), %s823_s25, 4294967168  ;;  %p18_p4 = scmp.ge.s32.totalorder %s1144_s24, 4   ;;  %s1538_s18 = smov %s1067_s19 }
 0x550   : > { %s1539_s19 = smov %s1071_s20  ;;  %s1540_s20 = smov %s1156_s27 }
 0x551   : > { %s1541_s21 = smov %s1144_s24  ;;  %20 = sbr.rel (!%p18_p4) target bundleno = 5 (0x5), region = 85 }
 0x558   :  { %828 = vsyncpa [#allocation3], 1 }
 0x559   :  { %830 = vsyncpa [#allocation3 + $0x1], 1 }
 0x55a   :  { %831 = vsyncpa [#allocation4], 1 }
 0x55b   :  { %833 = vsyncpa [#allocation4 + $0x1], 1 }

</bundles_post_ra>
